<compile_context>
chip_gen: v6e
topology: v6e:2x2x1
jax: 0.10.0
libtpu: 0.0.40
codegen_flags: <defaults>
</compile_context>

<pallas_src>
import functools

import jax
import jax.numpy as jnp
from jax.experimental import pallas as pl
from jax.experimental.pallas import tpu as pltpu


def _round_up(x, m):
    return (x + m - 1) // m * m


def rnn_recurrence_kernel(x2d_ref, h0_ref, w1x_ref, w1h_ref, b1_ref,
                          h_all_ref, h_fin_ref, u_ref, *, T, Bp):
    """All T RNN steps in a single grid step.

    Phase 1 (batched, M = T*Bp): U = X @ W1x + b1 for every time step at once.
    Phase 2 (sequential):        s_t = U_t + s_{t-1} @ W1h  (one small matmul
    on the recurrent chain); every state slab is written to h_all for the
    deferred, parallel output pass.
    """
    cdt = w1h_ref.dtype  # MXU operand dtype (bf16 or f32)

    # Phase 1: input projection for all steps, one big GEMM (off the chain).
    u_ref[...] = (
        jnp.dot(x2d_ref[...], w1x_ref[...], preferred_element_type=jnp.float32)
        + b1_ref[...])

    # Phase 2: recurrence.  State slab s = [hidden | o1 | pad], carried in f32.
    def step(t, s):
        r0 = pl.multiple_of(t * Bp, Bp)
        u_t = u_ref[pl.ds(r0, Bp), :]
        s_new = u_t + jnp.dot(s.astype(cdt), w1h_ref[...],
                              preferred_element_type=jnp.float32)
        h_all_ref[pl.ds(r0, Bp), :] = s_new
        return s_new

    s_fin = jax.lax.fori_loop(0, T, step, h0_ref[...], unroll=True)
    h_fin_ref[...] = s_fin


def rnn_output_kernel(h_ref, w2_ref, b2_ref, logp_ref):
    """Deferred output projection + LogSoftmax over a block of T*Bp rows."""
    cdt = w2_ref.dtype
    o2 = (jnp.dot(h_ref[...].astype(cdt), w2_ref[...],
                  preferred_element_type=jnp.float32) + b2_ref[...])
    # nn.Dropout(0.1) is identity at inference (module.eval()).
    # TODO(synk): training-mode dropout (pltpu.prng_seed + prng_random_bits
    # mask before the log-softmax) intentionally omitted.
    m = jnp.max(o2, axis=-1, keepdims=True)
    lse = m + jnp.log(jnp.sum(jnp.exp(o2 - m), axis=-1, keepdims=True))
    logp_ref[...] = o2 - lse


@functools.partial(jax.jit, static_argnames=("compute_dtype",))
def rnn_forward_seq(xs, h0, params, *, compute_dtype=jnp.bfloat16):
    """Run the RNN cell over a whole sequence.

    xs: (T, B, I) inputs, h0: (B, H) initial hidden.
    Returns (log_probs (T, B, O), h_final (B, H)).
    """
    T, B, I = xs.shape
    H = params["wih_h"].shape[1]
    O = params["woo_o"].shape[1]
    f32 = jnp.float32
    cdt = jnp.dtype(compute_dtype)

    # Lane/sublane-dense padded sizes.
    Bp = _round_up(max(B, 8), 8)        # f32 sublane multiple
    Ip = _round_up(I, 128)              # lane multiple
    SW = _round_up(H + O, 128)          # fused slab width: [hidden | o1 | pad]
    R = T * Bp                          # rows of the flattened (time*batch) GEMMs

    # ---- pad activations; flatten time into the matmul M dimension ----
    xs_p = jnp.zeros((T, Bp, Ip), f32).at[:, :B, :I].set(xs.astype(f32))
    x2d = xs_p.reshape(R, Ip).astype(cdt)                 # matmul operand dtype
    h0_p = jnp.zeros((Bp, SW), f32).at[:B, :H].set(h0.astype(f32))

    # ---- fuse + pad weights once; matmul operands in compute dtype ----
    w1x = (jnp.zeros((Ip, SW), f32)
           .at[:I, :H].set(params["wih_x"])
           .at[:I, H:H + O].set(params["wio_x"])).astype(cdt)
    w1h = (jnp.zeros((SW, SW), f32)
           .at[:H, :H].set(params["wih_h"])
           .at[:H, H:H + O].set(params["wio_h"])).astype(cdt)
    b1 = (jnp.zeros((1, SW), f32)
          .at[:, :H].set(params["bih"])
          .at[:, H:H + O].set(params["bio"]))
    w2 = (jnp.zeros((SW, SW), f32)
          .at[:H, :O].set(params["woo_h"])
          .at[H:H + O, :O].set(params["woo_o"])).astype(cdt)
    # Padded logit columns get a huge negative bias so log-softmax ignores them.
    b2 = jnp.full((1, SW), -1e30, f32).at[:, :O].set(params["boo"])

    c2 = lambda i: (0, 0)

    # ---- Call 1: sequential recurrence, single grid step, weights resident ----
    h_all, h_fin = pl.pallas_call(
        functools.partial(rnn_recurrence_kernel, T=T, Bp=Bp),
        out_shape=(jax.ShapeDtypeStruct((R, SW), f32),    # all per-step slabs
                   jax.ShapeDtypeStruct((Bp, SW), f32)),  # final slab
        grid_spec=pltpu.PrefetchScalarGridSpec(
            num_scalar_prefetch=0,
            grid=(1,),
            in_specs=[
                pl.BlockSpec((R, Ip), c2),     # x, flattened (T*Bp, Ip)
                pl.BlockSpec((Bp, SW), c2),    # h0 slab
                pl.BlockSpec((Ip, SW), c2),    # W1x
                pl.BlockSpec((SW, SW), c2),    # W1h
                pl.BlockSpec((1, SW), c2),     # b1
            ],
            out_specs=(
                pl.BlockSpec((R, SW), c2),
                pl.BlockSpec((Bp, SW), c2),
            ),
            scratch_shapes=[pltpu.VMEM((R, SW), f32)],     # precomputed U
        ),
        compiler_params=pltpu.CompilerParams(
            dimension_semantics=("arbitrary",)),           # sequential recurrence
    )(x2d, h0_p, w1x, w1h, b1)

    # ---- Call 2: deferred output projection + log-softmax, fully parallel ----
    G = 2 if R >= 16 else 1               # shard row blocks across TCs (v7x)
    Rb = _round_up(-(-R // G), 8)
    Rp = Rb * G
    h2d = h_all
    if Rp > R:
        h2d = jnp.zeros((Rp, SW), f32).at[:R].set(h_all)

    logp2d = pl.pallas_call(
        rnn_output_kernel,
        out_shape=jax.ShapeDtypeStruct((Rp, SW), f32),
        grid=(G,),
        in_specs=[
            pl.BlockSpec((Rb, SW), lambda g: (g, 0)),
            pl.BlockSpec((SW, SW), lambda g: (0, 0)),
            pl.BlockSpec((1, SW), lambda g: (0, 0)),
        ],
        out_specs=pl.BlockSpec((Rb, SW), lambda g: (g, 0)),
        compiler_params=pltpu.CompilerParams(
            dimension_semantics=("parallel",)),
    )(h2d, w2, b2)

    logp = logp2d[:R].reshape(T, Bp, SW)[:, :B, :O]
    return logp, h_fin[:B, :H]


def rnn_forward(x, h, params, *, compute_dtype=jnp.bfloat16):
    """Single-cell step matching the PyTorch module signature."""
    logp, h_new = rnn_forward_seq(x[None], h, params, compute_dtype=compute_dtype)
    return logp[0], h_new


def rnn_forward_ref(xs, h, params):
    """Pure-JAX reference mirroring the PyTorch forward, stepped over time."""
    wih = jnp.concatenate([params["wih_x"], params["wih_h"]], axis=0)
    wio = jnp.concatenate([params["wio_x"], params["wio_h"]], axis=0)
    woo = jnp.concatenate([params["woo_h"], params["woo_o"]], axis=0)
    outs = []
    for t in range(xs.shape[0]):
        ic = jnp.concatenate([xs[t], h], axis=1)
        h_new = ic @ wih + params["bih"]
        o = ic @ wio + params["bio"]
        oc = jnp.concatenate([h_new, o], axis=1)
        o = oc @ woo + params["boo"]
        o = o - jax.scipy.special.logsumexp(o, axis=1, keepdims=True)
        outs.append(o)
        h = h_new
    return jnp.stack(outs, axis=0), h


def init_params(key, input_size, hidden_size, output_size):
    ks = jax.random.split(key, 6)
    s = 0.1
    return {
        # i2h: Linear(input_size + hidden_size, hidden_size), split along inputs
        "wih_x": s * jax.random.normal(ks[0], (input_size, hidden_size), jnp.float32),
        "wih_h": s * jax.random.normal(ks[1], (hidden_size, hidden_size), jnp.float32),
        "bih":   s * jax.random.normal(ks[2], (1, hidden_size), jnp.float32),
        # i2o: Linear(input_size + hidden_size, output_size)
        "wio_x": s * jax.random.normal(ks[3], (input_size, output_size), jnp.float32),
        "wio_h": s * jax.random.normal(ks[4], (hidden_size, output_size), jnp.float32),
        "bio":   s * jax.random.normal(ks[5], (1, output_size), jnp.float32),
        # o2o: Linear(hidden_size + output_size, output_size)
        "woo_h": s * jax.random.normal(jax.random.fold_in(key, 10),
                                       (hidden_size, output_size), jnp.float32),
        "woo_o": s * jax.random.normal(jax.random.fold_in(key, 11),
                                       (output_size, output_size), jnp.float32),
        "boo":   s * jax.random.normal(jax.random.fold_in(key, 12),
                                       (1, output_size), jnp.float32),
    }


if __name__ == "__main__":
    # Small, module-consistent shapes: character-level RNN cell over a sequence.
    seq_len, batch = 8, 2
    input_size, hidden_size, output_size = 64, 32, 64

    key = jax.random.PRNGKey(0)
    kx, kh, kp = jax.random.split(key, 3)
    xs = jax.random.normal(kx, (seq_len, batch, input_size), jnp.float32)
    h0 = jax.random.normal(kh, (batch, hidden_size), jnp.float32)
    params = init_params(kp, input_size, hidden_size, output_size)

    ref_log_probs, ref_h_final = rnn_forward_ref(xs, h0, params)

    # f32 compute path: bit-tight agreement with the pure-JAX reference.
    lp32, hf32 = rnn_forward_seq(xs, h0, params, compute_dtype=jnp.float32)
    jax.block_until_ready((lp32, hf32))
    assert lp32.shape == (seq_len, batch, output_size)
    assert hf32.shape == (batch, hidden_size)
    assert jnp.allclose(lp32, ref_log_probs, atol=1e-4, rtol=1e-4)
    assert jnp.allclose(hf32, ref_h_final, atol=1e-4, rtol=1e-4)

    # bf16 MXU-operand path (default / fast): looser tolerance, f32 accumulation.
    lp16, hf16 = rnn_forward_seq(xs, h0, params)
    jax.block_until_ready((lp16, hf16))
    assert jnp.allclose(lp16, ref_log_probs, atol=5e-2, rtol=5e-2)
    assert jnp.allclose(hf16, ref_h_final, atol=5e-2, rtol=5e-2)

    # Single-step path (original module signature) also matches.
    lp1, h1 = rnn_forward(xs[0], h0, params, compute_dtype=jnp.float32)
    jax.block_until_ready((lp1, h1))
    assert jnp.allclose(lp1, ref_log_probs[0], atol=1e-4, rtol=1e-4)

    print("KERNEL_OK")
</pallas_src>

<mosaic_0001>
module attributes {stable_mosaic.version = 11 : i64} {
  func.func @rnn_recurrence_kernel(%arg0: i32, %arg1: memref<64x128xf32, #tpu.memory_space<vmem>>, %arg2: memref<8x128xf32, #tpu.memory_space<vmem>>, %arg3: memref<128x128xf32, #tpu.memory_space<vmem>>, %arg4: memref<128x128xf32, #tpu.memory_space<vmem>>, %arg5: memref<1x128xf32, #tpu.memory_space<vmem>>, %arg6: memref<64x128xf32, #tpu.memory_space<vmem>>, %arg7: memref<8x128xf32, #tpu.memory_space<vmem>>, %arg8: memref<64x128xf32, #tpu.memory_space<vmem>>) attributes {dimension_semantics = [#tpu.dimension_semantics<arbitrary>], iteration_bounds = array<i64: 1>, scalar_prefetch = 0 : i64, scratch_operands = 1 : i64, tpu.core_type = #tpu.core_type<tc>, window_params = [{pipeline_mode = #tpu.pipeline_mode<synchronous>, transform_indices = @transform_0, window_bounds = array<i64: 64, 128>}, {pipeline_mode = #tpu.pipeline_mode<synchronous>, transform_indices = @transform_1, window_bounds = array<i64: 8, 128>}, {pipeline_mode = #tpu.pipeline_mode<synchronous>, transform_indices = @transform_2, window_bounds = array<i64: 128, 128>}, {pipeline_mode = #tpu.pipeline_mode<synchronous>, transform_indices = @transform_3, window_bounds = array<i64: 128, 128>}, {pipeline_mode = #tpu.pipeline_mode<synchronous>, transform_indices = @transform_4, window_bounds = array<i64: 1, 128>}, {pipeline_mode = #tpu.pipeline_mode<synchronous>, transform_indices = @transform_5, window_bounds = array<i64: 64, 128>}, {pipeline_mode = #tpu.pipeline_mode<synchronous>, transform_indices = @transform_6, window_bounds = array<i64: 8, 128>}]} {
    %c0 = arith.constant 0 : index
    %c0_0 = arith.constant 0 : index
    %0 = vector.load %arg1[%c0, %c0_0] : memref<64x128xf32, #tpu.memory_space<vmem>>, vector<64x128xf32>
    %c0_1 = arith.constant 0 : index
    %c0_2 = arith.constant 0 : index
    %1 = vector.load %arg3[%c0_1, %c0_2] : memref<128x128xf32, #tpu.memory_space<vmem>>, vector<128x128xf32>
    %cst = arith.constant dense<0.000000e+00> : vector<64x128xf32>
    %2 = tpu.matmul %0, %1, %cst {dimension_numbers = #tpu.dot_dimension_numbers<[1], [0], [0], [1], [0, 0, 1, 1], [], []>} : vector<64x128xf32>, vector<128x128xf32>, vector<64x128xf32> -> vector<64x128xf32>
    %c0_3 = arith.constant 0 : index
    %c0_4 = arith.constant 0 : index
    %3 = vector.load %arg5[%c0_3, %c0_4] : memref<1x128xf32, #tpu.memory_space<vmem>>, vector<1x128xf32>
    %4 = vector.broadcast %3 : vector<1x128xf32> to vector<64x128xf32>
    %5 = arith.addf %2, %4 : vector<64x128xf32>
    %c0_5 = arith.constant 0 : index
    %c0_6 = arith.constant 0 : index
    %6 = vector.load %arg8[%c0_5, %c0_6] : memref<64x128xf32, #tpu.memory_space<vmem>>, vector<64x128xf32>
    tpu.vector_store %arg8[%c0_5, %c0_6], %5 {strides = array<i32>} : memref<64x128xf32, #tpu.memory_space<vmem>>, vector<64x128xf32>,
    %c0_7 = arith.constant 0 : index
    %c0_8 = arith.constant 0 : index
    %7 = vector.load %arg2[%c0_7, %c0_8] : memref<8x128xf32, #tpu.memory_space<vmem>>, vector<8x128xf32>
    %c0_i32 = arith.constant 0 : i32
    %c8_i32 = arith.constant 8 : i32
    %8 = arith.muli %c0_i32, %c8_i32 : i32
    %9 = tpu.assume_multiple %8, 8 : i32
    %10 = arith.index_cast %9 : i32 to index
    %c0_9 = arith.constant 0 : index
    %11 = vector.load %arg8[%10, %c0_9] : memref<64x128xf32, #tpu.memory_space<vmem>>, vector<8x128xf32>
    %c0_10 = arith.constant 0 : index
    %c0_11 = arith.constant 0 : index
    %12 = vector.load %arg4[%c0_10, %c0_11] : memref<128x128xf32, #tpu.memory_space<vmem>>, vector<128x128xf32>
    %cst_12 = arith.constant dense<0.000000e+00> : vector<8x128xf32>
    %13 = tpu.matmul %7, %12, %cst_12 {dimension_numbers = #tpu.dot_dimension_numbers<[1], [0], [0], [1], [0, 0, 1, 1], [], []>} : vector<8x128xf32>, vector<128x128xf32>, vector<8x128xf32> -> vector<8x128xf32>
    %14 = arith.addf %11, %13 : vector<8x128xf32>
    %15 = arith.index_cast %9 : i32 to index
    %c0_13 = arith.constant 0 : index
    %16 = vector.load %arg6[%15, %c0_13] : memref<64x128xf32, #tpu.memory_space<vmem>>, vector<8x128xf32>
    tpu.vector_store %arg6[%15, %c0_13], %14 {strides = array<i32>} : memref<64x128xf32, #tpu.memory_space<vmem>>, vector<8x128xf32>,
    %c1_i32 = arith.constant 1 : i32
    %c8_i32_14 = arith.constant 8 : i32
    %17 = arith.muli %c1_i32, %c8_i32_14 : i32
    %18 = tpu.assume_multiple %17, 8 : i32
    %19 = arith.index_cast %18 : i32 to index
    %c0_15 = arith.constant 0 : index
    %20 = vector.load %arg8[%19, %c0_15] : memref<64x128xf32, #tpu.memory_space<vmem>>, vector<8x128xf32>
    %c0_16 = arith.constant 0 : index
    %c0_17 = arith.constant 0 : index
    %21 = vector.load %arg4[%c0_16, %c0_17] : memref<128x128xf32, #tpu.memory_space<vmem>>, vector<128x128xf32>
    %cst_18 = arith.constant dense<0.000000e+00> : vector<8x128xf32>
    %22 = tpu.matmul %14, %21, %cst_18 {dimension_numbers = #tpu.dot_dimension_numbers<[1], [0], [0], [1], [0, 0, 1, 1], [], []>} : vector<8x128xf32>, vector<128x128xf32>, vector<8x128xf32> -> vector<8x128xf32>
    %23 = arith.addf %20, %22 : vector<8x128xf32>
    %24 = arith.index_cast %18 : i32 to index
    %c0_19 = arith.constant 0 : index
    %25 = vector.load %arg6[%24, %c0_19] : memref<64x128xf32, #tpu.memory_space<vmem>>, vector<8x128xf32>
    tpu.vector_store %arg6[%24, %c0_19], %23 {strides = array<i32>} : memref<64x128xf32, #tpu.memory_space<vmem>>, vector<8x128xf32>,
    %c2_i32 = arith.constant 2 : i32
    %c8_i32_20 = arith.constant 8 : i32
    %26 = arith.muli %c2_i32, %c8_i32_20 : i32
    %27 = tpu.assume_multiple %26, 8 : i32
    %28 = arith.index_cast %27 : i32 to index
    %c0_21 = arith.constant 0 : index
    %29 = vector.load %arg8[%28, %c0_21] : memref<64x128xf32, #tpu.memory_space<vmem>>, vector<8x128xf32>
    %c0_22 = arith.constant 0 : index
    %c0_23 = arith.constant 0 : index
    %30 = vector.load %arg4[%c0_22, %c0_23] : memref<128x128xf32, #tpu.memory_space<vmem>>, vector<128x128xf32>
    %cst_24 = arith.constant dense<0.000000e+00> : vector<8x128xf32>
    %31 = tpu.matmul %23, %30, %cst_24 {dimension_numbers = #tpu.dot_dimension_numbers<[1], [0], [0], [1], [0, 0, 1, 1], [], []>} : vector<8x128xf32>, vector<128x128xf32>, vector<8x128xf32> -> vector<8x128xf32>
    %32 = arith.addf %29, %31 : vector<8x128xf32>
    %33 = arith.index_cast %27 : i32 to index
    %c0_25 = arith.constant 0 : index
    %34 = vector.load %arg6[%33, %c0_25] : memref<64x128xf32, #tpu.memory_space<vmem>>, vector<8x128xf32>
    tpu.vector_store %arg6[%33, %c0_25], %32 {strides = array<i32>} : memref<64x128xf32, #tpu.memory_space<vmem>>, vector<8x128xf32>,
    %c3_i32 = arith.constant 3 : i32
    %c8_i32_26 = arith.constant 8 : i32
    %35 = arith.muli %c3_i32, %c8_i32_26 : i32
    %36 = tpu.assume_multiple %35, 8 : i32
    %37 = arith.index_cast %36 : i32 to index
    %c0_27 = arith.constant 0 : index
    %38 = vector.load %arg8[%37, %c0_27] : memref<64x128xf32, #tpu.memory_space<vmem>>, vector<8x128xf32>
    %c0_28 = arith.constant 0 : index
    %c0_29 = arith.constant 0 : index
    %39 = vector.load %arg4[%c0_28, %c0_29] : memref<128x128xf32, #tpu.memory_space<vmem>>, vector<128x128xf32>
    %cst_30 = arith.constant dense<0.000000e+00> : vector<8x128xf32>
    %40 = tpu.matmul %32, %39, %cst_30 {dimension_numbers = #tpu.dot_dimension_numbers<[1], [0], [0], [1], [0, 0, 1, 1], [], []>} : vector<8x128xf32>, vector<128x128xf32>, vector<8x128xf32> -> vector<8x128xf32>
    %41 = arith.addf %38, %40 : vector<8x128xf32>
    %42 = arith.index_cast %36 : i32 to index
    %c0_31 = arith.constant 0 : index
    %43 = vector.load %arg6[%42, %c0_31] : memref<64x128xf32, #tpu.memory_space<vmem>>, vector<8x128xf32>
    tpu.vector_store %arg6[%42, %c0_31], %41 {strides = array<i32>} : memref<64x128xf32, #tpu.memory_space<vmem>>, vector<8x128xf32>,
    %c4_i32 = arith.constant 4 : i32
    %c8_i32_32 = arith.constant 8 : i32
    %44 = arith.muli %c4_i32, %c8_i32_32 : i32
    %45 = tpu.assume_multiple %44, 8 : i32
    %46 = arith.index_cast %45 : i32 to index
    %c0_33 = arith.constant 0 : index
    %47 = vector.load %arg8[%46, %c0_33] : memref<64x128xf32, #tpu.memory_space<vmem>>, vector<8x128xf32>
    %c0_34 = arith.constant 0 : index
    %c0_35 = arith.constant 0 : index
    %48 = vector.load %arg4[%c0_34, %c0_35] : memref<128x128xf32, #tpu.memory_space<vmem>>, vector<128x128xf32>
    %cst_36 = arith.constant dense<0.000000e+00> : vector<8x128xf32>
    %49 = tpu.matmul %41, %48, %cst_36 {dimension_numbers = #tpu.dot_dimension_numbers<[1], [0], [0], [1], [0, 0, 1, 1], [], []>} : vector<8x128xf32>, vector<128x128xf32>, vector<8x128xf32> -> vector<8x128xf32>
    %50 = arith.addf %47, %49 : vector<8x128xf32>
    %51 = arith.index_cast %45 : i32 to index
    %c0_37 = arith.constant 0 : index
    %52 = vector.load %arg6[%51, %c0_37] : memref<64x128xf32, #tpu.memory_space<vmem>>, vector<8x128xf32>
    tpu.vector_store %arg6[%51, %c0_37], %50 {strides = array<i32>} : memref<64x128xf32, #tpu.memory_space<vmem>>, vector<8x128xf32>,
    %c5_i32 = arith.constant 5 : i32
    %c8_i32_38 = arith.constant 8 : i32
    %53 = arith.muli %c5_i32, %c8_i32_38 : i32
    %54 = tpu.assume_multiple %53, 8 : i32
    %55 = arith.index_cast %54 : i32 to index
    %c0_39 = arith.constant 0 : index
    %56 = vector.load %arg8[%55, %c0_39] : memref<64x128xf32, #tpu.memory_space<vmem>>, vector<8x128xf32>
    %c0_40 = arith.constant 0 : index
    %c0_41 = arith.constant 0 : index
    %57 = vector.load %arg4[%c0_40, %c0_41] : memref<128x128xf32, #tpu.memory_space<vmem>>, vector<128x128xf32>
    %cst_42 = arith.constant dense<0.000000e+00> : vector<8x128xf32>
    %58 = tpu.matmul %50, %57, %cst_42 {dimension_numbers = #tpu.dot_dimension_numbers<[1], [0], [0], [1], [0, 0, 1, 1], [], []>} : vector<8x128xf32>, vector<128x128xf32>, vector<8x128xf32> -> vector<8x128xf32>
    %59 = arith.addf %56, %58 : vector<8x128xf32>
    %60 = arith.index_cast %54 : i32 to index
    %c0_43 = arith.constant 0 : index
    %61 = vector.load %arg6[%60, %c0_43] : memref<64x128xf32, #tpu.memory_space<vmem>>, vector<8x128xf32>
    tpu.vector_store %arg6[%60, %c0_43], %59 {strides = array<i32>} : memref<64x128xf32, #tpu.memory_space<vmem>>, vector<8x128xf32>,
    %c6_i32 = arith.constant 6 : i32
    %c8_i32_44 = arith.constant 8 : i32
    %62 = arith.muli %c6_i32, %c8_i32_44 : i32
    %63 = tpu.assume_multiple %62, 8 : i32
    %64 = arith.index_cast %63 : i32 to index
    %c0_45 = arith.constant 0 : index
    %65 = vector.load %arg8[%64, %c0_45] : memref<64x128xf32, #tpu.memory_space<vmem>>, vector<8x128xf32>
    %c0_46 = arith.constant 0 : index
    %c0_47 = arith.constant 0 : index
    %66 = vector.load %arg4[%c0_46, %c0_47] : memref<128x128xf32, #tpu.memory_space<vmem>>, vector<128x128xf32>
    %cst_48 = arith.constant dense<0.000000e+00> : vector<8x128xf32>
    %67 = tpu.matmul %59, %66, %cst_48 {dimension_numbers = #tpu.dot_dimension_numbers<[1], [0], [0], [1], [0, 0, 1, 1], [], []>} : vector<8x128xf32>, vector<128x128xf32>, vector<8x128xf32> -> vector<8x128xf32>
    %68 = arith.addf %65, %67 : vector<8x128xf32>
    %69 = arith.index_cast %63 : i32 to index
    %c0_49 = arith.constant 0 : index
    %70 = vector.load %arg6[%69, %c0_49] : memref<64x128xf32, #tpu.memory_space<vmem>>, vector<8x128xf32>
    tpu.vector_store %arg6[%69, %c0_49], %68 {strides = array<i32>} : memref<64x128xf32, #tpu.memory_space<vmem>>, vector<8x128xf32>,
    %c7_i32 = arith.constant 7 : i32
    %c8_i32_50 = arith.constant 8 : i32
    %71 = arith.muli %c7_i32, %c8_i32_50 : i32
    %72 = tpu.assume_multiple %71, 8 : i32
    %73 = arith.index_cast %72 : i32 to index
    %c0_51 = arith.constant 0 : index
    %74 = vector.load %arg8[%73, %c0_51] : memref<64x128xf32, #tpu.memory_space<vmem>>, vector<8x128xf32>
    %c0_52 = arith.constant 0 : index
    %c0_53 = arith.constant 0 : index
    %75 = vector.load %arg4[%c0_52, %c0_53] : memref<128x128xf32, #tpu.memory_space<vmem>>, vector<128x128xf32>
    %cst_54 = arith.constant dense<0.000000e+00> : vector<8x128xf32>
    %76 = tpu.matmul %68, %75, %cst_54 {dimension_numbers = #tpu.dot_dimension_numbers<[1], [0], [0], [1], [0, 0, 1, 1], [], []>} : vector<8x128xf32>, vector<128x128xf32>, vector<8x128xf32> -> vector<8x128xf32>
    %77 = arith.addf %74, %76 : vector<8x128xf32>
    %78 = arith.index_cast %72 : i32 to index
    %c0_55 = arith.constant 0 : index
    %79 = vector.load %arg6[%78, %c0_55] : memref<64x128xf32, #tpu.memory_space<vmem>>, vector<8x128xf32>
    tpu.vector_store %arg6[%78, %c0_55], %77 {strides = array<i32>} : memref<64x128xf32, #tpu.memory_space<vmem>>, vector<8x128xf32>,
    %c8_i32_56 = arith.constant 8 : i32
    %c0_57 = arith.constant 0 : index
    %c0_58 = arith.constant 0 : index
    %80 = vector.load %arg7[%c0_57, %c0_58] : memref<8x128xf32, #tpu.memory_space<vmem>>, vector<8x128xf32>
    tpu.vector_store %arg7[%c0_57, %c0_58], %77 {strides = array<i32>} : memref<8x128xf32, #tpu.memory_space<vmem>>, vector<8x128xf32>,
    return
  }
  func.func @transform_0(%arg0: i32) -> (i32, i32) {
    %c0_i32 = arith.constant 0 : i32
    %c0_i32_0 = arith.constant 0 : i32
    %c0_i32_1 = arith.constant 0 : i32
    return %c0_i32, %c0_i32_0 : i32, i32
  }
  func.func @transform_1(%arg0: i32) -> (i32, i32) {
    %c0_i32 = arith.constant 0 : i32
    %c0_i32_0 = arith.constant 0 : i32
    %c0_i32_1 = arith.constant 0 : i32
    return %c0_i32, %c0_i32_0 : i32, i32
  }
  func.func @transform_2(%arg0: i32) -> (i32, i32) {
    %c0_i32 = arith.constant 0 : i32
    %c0_i32_0 = arith.constant 0 : i32
    %c0_i32_1 = arith.constant 0 : i32
    return %c0_i32, %c0_i32_0 : i32, i32
  }
  func.func @transform_3(%arg0: i32) -> (i32, i32) {
    %c0_i32 = arith.constant 0 : i32
    %c0_i32_0 = arith.constant 0 : i32
    %c0_i32_1 = arith.constant 0 : i32
    return %c0_i32, %c0_i32_0 : i32, i32
  }
  func.func @transform_4(%arg0: i32) -> (i32, i32) {
    %c0_i32 = arith.constant 0 : i32
    %c0_i32_0 = arith.constant 0 : i32
    %c0_i32_1 = arith.constant 0 : i32
    return %c0_i32, %c0_i32_0 : i32, i32
  }
  func.func @transform_5(%arg0: i32) -> (i32, i32) {
    %c0_i32 = arith.constant 0 : i32
    %c0_i32_0 = arith.constant 0 : i32
    %c0_i32_1 = arith.constant 0 : i32
    return %c0_i32, %c0_i32_0 : i32, i32
  }
  func.func @transform_6(%arg0: i32) -> (i32, i32) {
    %c0_i32 = arith.constant 0 : i32
    %c0_i32_0 = arith.constant 0 : i32
    %c0_i32_1 = arith.constant 0 : i32
    return %c0_i32, %c0_i32_0 : i32, i32
  }
}

module attributes {stable_mosaic.version = 11 : i64} {
  func.func @rnn_output_kernel(%arg0: i32, %arg1: memref<32x128xf32, #tpu.memory_space<vmem>>, %arg2: memref<128x128xf32, #tpu.memory_space<vmem>>, %arg3: memref<1x128xf32, #tpu.memory_space<vmem>>, %arg4: memref<32x128xf32, #tpu.memory_space<vmem>>) attributes {dimension_semantics = [#tpu.dimension_semantics<parallel>], iteration_bounds = array<i64: 2>, scalar_prefetch = 0 : i64, scratch_operands = 0 : i64, tpu.core_type = #tpu.core_type<tc>, window_params = [{transform_indices = @transform_0, window_bounds = array<i64: 32, 128>}, {pipeline_mode = #tpu.pipeline_mode<synchronous>, transform_indices = @transform_1, window_bounds = array<i64: 128, 128>}, {pipeline_mode = #tpu.pipeline_mode<synchronous>, transform_indices = @transform_2, window_bounds = array<i64: 1, 128>}, {transform_indices = @transform_3, window_bounds = array<i64: 32, 128>}]} {
    %c0 = arith.constant 0 : index
    %c0_0 = arith.constant 0 : index
    %0 = vector.load %arg1[%c0, %c0_0] : memref<32x128xf32, #tpu.memory_space<vmem>>, vector<32x128xf32>
    %c0_1 = arith.constant 0 : index
    %c0_2 = arith.constant 0 : index
    %1 = vector.load %arg2[%c0_1, %c0_2] : memref<128x128xf32, #tpu.memory_space<vmem>>, vector<128x128xf32>
    %cst = arith.constant dense<0.000000e+00> : vector<32x128xf32>
    %2 = tpu.matmul %0, %1, %cst {dimension_numbers = #tpu.dot_dimension_numbers<[1], [0], [0], [1], [0, 0, 1, 1], [], []>} : vector<32x128xf32>, vector<128x128xf32>, vector<32x128xf32> -> vector<32x128xf32>
    %c0_3 = arith.constant 0 : index
    %c0_4 = arith.constant 0 : index
    %3 = vector.load %arg3[%c0_3, %c0_4] : memref<1x128xf32, #tpu.memory_space<vmem>>, vector<1x128xf32>
    %4 = vector.broadcast %3 : vector<1x128xf32> to vector<32x128xf32>
    %5 = arith.addf %2, %4 : vector<32x128xf32>
    %cst_5 = arith.constant dense<0xFF800000> : vector<32xf32>
    %6 = vector.multi_reduction <maximumf>, %5, %cst_5 [1] : vector<32x128xf32> to vector<32xf32>
    %7 = vector.shape_cast %6 : vector<32xf32> to vector<32x1xf32>
    %8 = vector.broadcast %7 : vector<32x1xf32> to vector<32x128xf32>
    %9 = arith.subf %5, %8 : vector<32x128xf32>
    %10 = math.exp %9 : vector<32x128xf32>
    %cst_6 = arith.constant dense<0.000000e+00> : vector<32xf32>
    %11 = vector.multi_reduction <add>, %10, %cst_6 [1] : vector<32x128xf32> to vector<32xf32>
    %12 = vector.shape_cast %11 : vector<32xf32> to vector<32x1xf32>
    %13 = math.log %12 : vector<32x1xf32>
    %14 = arith.addf %7, %13 : vector<32x1xf32>
    %15 = vector.broadcast %14 : vector<32x1xf32> to vector<32x128xf32>
    %16 = arith.subf %5, %15 : vector<32x128xf32>
    %c0_7 = arith.constant 0 : index
    %c0_8 = arith.constant 0 : index
    %17 = vector.load %arg4[%c0_7, %c0_8] : memref<32x128xf32, #tpu.memory_space<vmem>>, vector<32x128xf32>
    tpu.vector_store %arg4[%c0_7, %c0_8], %16 {strides = array<i32>} : memref<32x128xf32, #tpu.memory_space<vmem>>, vector<32x128xf32>,
    return
  }
  func.func @transform_0(%arg0: i32) -> (i32, i32) {
    %c0_i32 = arith.constant 0 : i32
    %c0_i32_0 = arith.constant 0 : i32
    return %arg0, %c0_i32 : i32, i32
  }
  func.func @transform_1(%arg0: i32) -> (i32, i32) {
    %c0_i32 = arith.constant 0 : i32
    %c0_i32_0 = arith.constant 0 : i32
    %c0_i32_1 = arith.constant 0 : i32
    return %c0_i32, %c0_i32_0 : i32, i32
  }
  func.func @transform_2(%arg0: i32) -> (i32, i32) {
    %c0_i32 = arith.constant 0 : i32
    %c0_i32_0 = arith.constant 0 : i32
    %c0_i32_1 = arith.constant 0 : i32
    return %c0_i32, %c0_i32_0 : i32, i32
  }
  func.func @transform_3(%arg0: i32) -> (i32, i32) {
    %c0_i32 = arith.constant 0 : i32
    %c0_i32_0 = arith.constant 0 : i32
    return %arg0, %c0_i32 : i32, i32
  }
}

</mosaic_0001>

<bundles_post_ra>
// kernel: rnn_forward_seq.3
= control target key start
LH: loop header
LB: loop body
LE: loop exit
PB: predicated region body
PF: predicated region fallthrough
CT: control target
= control target key end

     0   :  { %s544_s12 = smov 0   ;;  %s621_s0 = inlined_call_operand.vmem [shape: f32[64,128], index: 0, kind: input, shape index: {}]   ;;  %s622_s1 = inlined_call_operand.vmem [shape: f32[128,128], index: 1, kind: input, shape index: {}]   ;;  %s623_s2 = inlined_call_operand.vmem [shape: f32[1,128], index: 2, kind: input, shape index: {}]   ;;  %s624_s3 = inlined_call_operand.vmem [shape: f32[64,128], index: 3, kind: output, shape index: {}]  }
   0x1 LB: > { %s390_s13 = sadd.s32 4294967295, %s522_s12   ;;  %p394_p0 = scmp.ge.s32.totalorder %s522_s12, 1  ;;  %s522_s12 = sphi %s544_s12, %s13_s12  }
   0x2   : > { %p138_p1 = scmp.lt.s32.totalorder %s522_s12, 3 }
   0x4   : > { %p139_p2 = pnand %p394_p0, %p138_p1 }
   0x5   : > { %s395_s30 = sshll.u32 (!%p139_p2), %s390_s13, 2 }
   0x6   : > { %142 = sbr.rel (%p139_p2) target bundleno = 565 (0x235), region = 32  ;;  %p163_p3 = scmp.lt.s32.totalorder (!%p139_p2), %s395_s30, 7 }
   0xb   : > { %v193_v0 = vld [vmem:[%s622_s1 + $0x78] sm:$0xff]  ;;  %v192_v1 = vld [vmem:[%s622_s1 + $0x70] sm:$0xff]  ;;  %v191_v2 = vld [vmem:[%s622_s1 + $0x68] sm:$0xff]  ;;  %s626_s30 = smov (!%p163_p3, %s395_s30), 7 }
   0xc   : > { %422 = vmatprep.subr.mxu0 %v193_v0  ;;  %460 = vmatprep.subr.mxu1 %v193_v0  ;;  %v190_v3 = vld [vmem:[%s622_s1 + $0x60] sm:$0xff]  ;;  %v189_v4 = vld [vmem:[%s622_s1 + $0x58] sm:$0xff]  ;;  %v188_v5 = vld [vmem:[%s622_s1 + $0x50] sm:$0xff]  ;;  %s396_s17 = sshll.u32 %s626_s30, 3 }
   0xd   : > { %423 = vmatpush3.msra.mxu0 %v193_v0  ;;  %476 = vmatpush3.msra.mxu1 %v193_v0  ;;  %v187_v6 = vld [vmem:[%s622_s1 + $0x48] sm:$0xff]  ;;  %v186_v7 = vld [vmem:[%s622_s1 + $0x40] sm:$0xff]  ;;  %v185_v8 = vld [vmem:[%s622_s1 + $0x38] sm:$0xff]  ;;  %s166_s22 = scalar_lea.vmem %s621_s0, %s396_s17  ;;  %s172_s29 = scalar_lea.vmem %s624_s3, %s396_s17 }
   0xe   : > { %424 = vmatprep.subr.mxu0 %v192_v1  ;;  %461 = vmatprep.subr.mxu1 %v192_v1  ;;  %v184_v9 = vld [vmem:[%s622_s1 + $0x30] sm:$0xff]  ;;  %v183_v10 = vld [vmem:[%s622_s1 + $0x28] sm:$0xff]  ;;  %v182_v11 = vld [vmem:[%s622_s1 + $0x20] sm:$0xff] }
   0xf   : > { %425 = vmatpush3.msra.mxu0 %v192_v1  ;;  %477 = vmatpush3.msra.mxu1 %v192_v1  ;;  %v181_v12 = vld [vmem:[%s622_s1 + $0x18] sm:$0xff]  ;;  %v180_v13 = vld [vmem:[%s622_s1 + $0x10] sm:$0xff]  ;;  %v179_v14 = vld [vmem:[%s622_s1 + $0x8] sm:$0xff] }
  0x10   : > { %426 = vmatprep.subr.mxu0 %v191_v2  ;;  %462 = vmatprep.subr.mxu1 %v191_v2  ;;  %v178_v15 = vld [vmem:[%s622_s1] sm:$0xff]  ;;  %v176_v17 = vld [vmem:[%s166_s22 + $0x10] sm:$0xff]  ;;  %v175_v18 = vld [vmem:[%s166_s22 + $0x8] sm:$0xff] }
  0x11   : > { %427 = vmatpush3.msra.mxu0 %v191_v2  ;;  %478 = vmatpush3.msra.mxu1 %v191_v2  ;;  %v174_v16 = vld [vmem:[%s166_s22] sm:$0xff]  ;;  %v177_v19 = vld [vmem:[%s166_s22 + $0x18] sm:$0xff] }
  0x12   : > { %428 = vmatprep.subr.mxu0 %v190_v3  ;;  %463 = vmatprep.subr.mxu1 %v190_v3  ;;  %v399_v22 = vld [vmem:[%s623_s2] ss:$0 sm:$0xff] }
  0x13   : > { %429 = vmatpush3.msra.mxu0 %v190_v3  ;;  %479 = vmatpush3.msra.mxu1 %v190_v3 }
  0x14   : > { %430 = vmatprep.subr.mxu0 %v189_v4  ;;  %464 = vmatprep.subr.mxu1 %v189_v4 }
  0x15   : > { %431 = vmatpush3.msra.mxu0 %v189_v4  ;;  %480 = vmatpush3.msra.mxu1 %v189_v4 }
  0x16   : > { %432 = vmatprep.subr.mxu0 %v188_v5  ;;  %465 = vmatprep.subr.mxu1 %v188_v5 }
  0x17   : > { %433 = vmatpush3.msra.mxu0 %v188_v5  ;;  %481 = vmatpush3.msra.mxu1 %v188_v5 }
  0x18   : > { %434 = vmatprep.subr.mxu0 %v187_v6  ;;  %466 = vmatprep.subr.mxu1 %v187_v6 }
  0x19   : > { %435 = vmatpush3.msra.mxu0 %v187_v6  ;;  %482 = vmatpush3.msra.mxu1 %v187_v6 }
  0x1a   : > { %436 = vmatprep.subr.mxu0 %v186_v7  ;;  %467 = vmatprep.subr.mxu1 %v186_v7 }
  0x1b   : > { %437 = vmatpush3.msra.mxu0 %v186_v7  ;;  %483 = vmatpush3.msra.mxu1 %v186_v7 }
  0x1c   : > { %438 = vmatprep.subr.mxu0 %v185_v8  ;;  %468 = vmatprep.subr.mxu1 %v185_v8 }
  0x1d   : > { %439 = vmatpush3.msra.mxu0 %v185_v8  ;;  %484 = vmatpush3.msra.mxu1 %v185_v8 }
  0x1e   : > { %440 = vmatprep.subr.mxu0 %v184_v9  ;;  %469 = vmatprep.subr.mxu1 %v184_v9 }
  0x1f   : > { %441 = vmatpush3.msra.mxu0 %v184_v9  ;;  %485 = vmatpush3.msra.mxu1 %v184_v9 }
  0x20   : > { %442 = vmatprep.subr.mxu0 %v183_v10  ;;  %470 = vmatprep.subr.mxu1 %v183_v10 }
  0x21   : > { %443 = vmatpush3.msra.mxu0 %v183_v10  ;;  %486 = vmatpush3.msra.mxu1 %v183_v10 }
  0x22   : > { %444 = vmatprep.subr.mxu0 %v182_v11  ;;  %471 = vmatprep.subr.mxu1 %v182_v11 }
  0x23   : > { %445 = vmatpush3.msra.mxu0 %v182_v11  ;;  %487 = vmatpush3.msra.mxu1 %v182_v11 }
  0x24   : > { %446 = vmatprep.subr.mxu0 %v181_v12  ;;  %472 = vmatprep.subr.mxu1 %v181_v12 }
  0x25   : > { %447 = vmatpush3.msra.mxu0 %v181_v12  ;;  %488 = vmatpush3.msra.mxu1 %v181_v12 }
  0x26   : > { %448 = vmatprep.subr.mxu0 %v180_v13  ;;  %473 = vmatprep.subr.mxu1 %v180_v13 }
  0x27   : > { %449 = vmatpush3.msra.mxu0 %v180_v13  ;;  %489 = vmatpush3.msra.mxu1 %v180_v13 }
  0x28   : > { %450 = vmatprep.subr.mxu0 %v179_v14  ;;  %474 = vmatprep.subr.mxu1 %v179_v14 }
  0x29   : > { %451 = vmatpush3.msra.mxu0 %v179_v14  ;;  %490 = vmatpush3.msra.mxu1 %v179_v14 }
  0x2a   : > { %452 = vmatprep.subr.mxu0 %v178_v15  ;;  %475 = vmatprep.subr.mxu1 %v178_v15 }
  0x2b   : > { %453 = vmatpush3.msra.mxu0 %v178_v15  ;;  %491 = vmatpush3.msra.mxu1 %v178_v15 }
  0x2c   : > { %454 = vmatprep.mubr.f32.mxu0 %v174_v16  ;;  %457 = vmatprep.mubr.f32.mxu1 %v176_v17 }
  0x2d   : > { %455 = vmatmul.mubr.f32.vlgmr.msra.gmra.mxu0 %v175_v18  ;;  %458 = vmatmul.mubr.f32.vlgmr.msra.gmra.mxu1 %v177_v19 }
  0xed   : > { %v456_v20 = vpop.f32.mrf.mxu0  ;;  %v459_v21 = vpop.f32.mrf.mxu1 }
  0xee   : > { %v273_v27 = vadd.f32 %v456_v20, %v399_v22  ;;  %v283_v28 = vadd.f32 %v459_v21, %v399_v22 }
  0xef   : > { %v267_v23 = vpop.f32.mrf.mxu0  ;;  %v277_v24 = vpop.f32.mrf.mxu1 }
  0xf0   : > { %v268_v25 = vadd.f32 %v399_v22, %v267_v23  ;;  %v278_v26 = vadd.f32 %v399_v22, %v277_v24 }
  0xf2   : > { %290 = vmax.xlane.f32.xlu1 %v278_v26  ;;  %286 = vmax.xlane.f32.xlu0 %v268_v25 }
  0xf6   : > { %292 = vmax.xlane.f32.xlu1 %v283_v28  ;;  %288 = vmax.xlane.f32.xlu0 %v273_v27 }
 0x17b   : > { %v291_v29 = vpop.xlane.xlu1 %290  ;;  %v287_v30 = vpop.xlane.xlu0 %286 }
 0x17c   : > { %v296_v31 = vsub.f32 %v278_v26, %v291_v29  ;;  %v294_v32 = vsub.f32 %v268_v25, %v287_v30 }
 0x17e   : > { %v298_v33 = vmul.f32 1.442695, %v294_v32  ;;  %v302_v36 = vmul.f32 1.442695, %v296_v31 }
 0x17f   : > { %v293_v34 = vpop.xlane.xlu1 %292  ;;  %v289_v35 = vpop.xlane.xlu0 %288 }
 0x180   : > { %v295_v37 = vsub.f32 %v273_v27, %v289_v35  ;;  %500 = vpow2.f32 %v298_v33  ;;  %v297_v38 = vsub.f32 %v283_v28, %v293_v34 }
 0x181   : > { %502 = vpow2.f32 %v302_v36 }
 0x182   : > { %v300_v39 = vmul.f32 1.442695, %v295_v37  ;;  %v304_v40 = vmul.f32 1.442695, %v297_v38 }
 0x184   : > { %504 = vpow2.f32 %v300_v39 }
 0x185   : > { %506 = vpow2.f32 %v304_v40 }
 0x18d   : > { %v501_v41 = vpop.eup %500 }
 0x18e   : > { %306 = vadd.xlane.f32.xlu0 %v501_v41  ;;  %v503_v42 = vpop.eup %502 }
 0x191   : > { %v505_v43 = vpop.eup %504 }
 0x192   : > { %310 = vadd.xlane.f32.xlu0 %v503_v42  ;;  %308 = vadd.xlane.f32.xlu1 %v505_v43  ;;  %v507_v44 = vpop.eup %506 }
 0x196   : > { %312 = vadd.xlane.f32.xlu1 %v507_v44 }
 0x217   : > { %v307_v45 = vpop.xlane.xlu0 %306 }
 0x218   : > { %508 = vlog2.f32 %v307_v45 }
 0x21b   : > { %v309_v46 = vpop.xlane.xlu1 %308  ;;  %v311_v47 = vpop.xlane.xlu0 %310 }
 0x21c   : > { %510 = vlog2.f32 %v309_v46 }
 0x21d   : > { %512 = vlog2.f32 %v311_v47 }
 0x21f   : > { %v313_v48 = vpop.xlane.xlu1 %312 }
 0x220   : > { %514 = vlog2.f32 %v313_v48 }
 0x225   : > { %v509_v49 = vpop.eup %508 }
 0x226   : > { %v315_v50 = vmul.f32 0.6931472, %v509_v49 }
 0x228   : > { %v322_v51 = vadd.f32 %v315_v50, %v287_v30 }
 0x229   : > { %v511_v52 = vpop.eup %510 }
 0x22a   : > { %v513_v53 = vpop.eup %512  ;;  %v326_v54 = vsub.f32 %v268_v25, %v322_v51  ;;  %v317_v55 = vmul.f32 0.6931472, %v511_v52 }
 0x22b   : > { %v319_v56 = vmul.f32 0.6931472, %v513_v53 }
 0x22c   : > { %330 = vst [vmem:[%s172_s29] sm:$0xff] %v326_v54  ;;  %v323_v57 = vadd.f32 %v317_v55, %v289_v35 }
 0x22d   : > { %v515_v58 = vpop.eup %514  ;;  %v324_v59 = vadd.f32 %v319_v56, %v291_v29 }
 0x22e   : > { %v327_v60 = vsub.f32 %v273_v27, %v323_v57  ;;  %v321_v61 = vmul.f32 0.6931472, %v515_v58 }
 0x22f   : > { %v328_v62 = vsub.f32 %v278_v26, %v324_v59 }
 0x230   : > { %331 = vst [vmem:[%s172_s29 + $0x8] sm:$0xff] %v327_v60  ;;  %v325_v63 = vadd.f32 %v321_v61, %v293_v34 }
 0x231   : > { %332 = vst [vmem:[%s172_s29 + $0x10] sm:$0xff] %v328_v62 }
 0x232   : > { %v329_v0 = vsub.f32 %v283_v28, %v325_v63 }
 0x234   : > { %333 = vst [vmem:[%s172_s29 + $0x18] sm:$0xff] %v329_v0 }
 0x235 PF: > { %s13_s12 = sadd.s32 1, %s522_s12  }
 0x236   : > { %p10_p4 = scmp.ge.s32.totalorder %s13_s12, 4  }
 0x238   :  { %12 = sbr.rel (!%p10_p4) target bundleno = 1 (0x1), region = 62 }

// kernel: rnn_forward_seq.2
= control target key start
LH: loop header
LB: loop body
LE: loop exit
PB: predicated region body
PF: predicated region fallthrough
CT: control target
= control target key end

     0   :  { %v1396_v2 = vmov 0.0   ;;  %vm1397_vm0 = vmmov 0   ;;  %s1915_s2 = inlined_call_operand.vmem [shape: f32[128,128], index: 2, kind: input, shape index: {}]   ;;  %s1916_s3 = inlined_call_operand.vmem [shape: f32[128,128], index: 3, kind: input, shape index: {}]   ;;  %s1917_s0 = inlined_call_operand.vmem [shape: f32[64,128], index: 0, kind: input, shape index: {}]   ;;  %s1918_s1 = inlined_call_operand.vmem [shape: f32[8,128], index: 1, kind: input, shape index: {}]   ;;  %s1919_s4 = inlined_call_operand.vmem [shape: f32[1,128], index: 4, kind: input, shape index: {}]   ;;  %s1920_s5 = inlined_call_operand.vmem [shape: f32[64,128], index: 5, kind: output, shape index: {0}]   ;;  %s1921_s6 = inlined_call_operand.vmem [shape: f32[8,128], index: 6, kind: output, shape index: {1}]  }
   0x1   :  { %v45_v0 = vld [vmem:[%s1915_s2 + $0x78] sm:$0xff]  ;;  %v44_v1 = vld [vmem:[%s1915_s2 + $0x70] sm:$0xff]  ;;  %1114 = vmatprep.subr.mxu1 %v1396_v2  ;;  %1146 = vmatprep.mubr.msk.f32.mxu1 %vm1397_vm0, %v1396_v2  ;;  %v43_v5 = vld [vmem:[%s1915_s2 + $0x68] sm:$0xff] }
   0x2   :  { %v1443_v3 = vld [vmem:[%s1916_s3 + $0x78] sm:$0xff]  ;;  %1070 = vmatprep.subr.mxu0 %v45_v0  ;;  %v1451_v4 = vld [vmem:[%s1916_s3 + $0x70] sm:$0xff]  ;;  %v1460_v6 = vld [vmem:[%s1916_s3 + $0x68] sm:$0xff] }
   0x3   :  { %1115 = vmatpush3.msra.mxu1 %v1443_v3  ;;  %1071 = vmatpush3.msra.mxu0 %v45_v0  ;;  %v42_v7 = vld [vmem:[%s1915_s2 + $0x60] sm:$0xff]  ;;  %v41_v9 = vld [vmem:[%s1915_s2 + $0x58] sm:$0xff]  ;;  %v40_v11 = vld [vmem:[%s1915_s2 + $0x50] sm:$0xff] }
   0x4   :  { %1116 = vmatprep.subr.mxu1 %v1396_v2  ;;  %1072 = vmatprep.subr.mxu0 %v44_v1  ;;  %v1470_v8 = vld [vmem:[%s1916_s3 + $0x60] sm:$0xff]  ;;  %v1480_v10 = vld [vmem:[%s1916_s3 + $0x58] sm:$0xff]  ;;  %v1490_v12 = vld [vmem:[%s1916_s3 + $0x50] sm:$0xff] }
   0x5   :  { %1117 = vmatpush3.msra.mxu1 %v1451_v4  ;;  %1073 = vmatpush3.msra.mxu0 %v44_v1  ;;  %v39_v13 = vld [vmem:[%s1915_s2 + $0x48] sm:$0xff]  ;;  %v38_v15 = vld [vmem:[%s1915_s2 + $0x40] sm:$0xff]  ;;  %v37_v17 = vld [vmem:[%s1915_s2 + $0x38] sm:$0xff] }
   0x6   :  { %1118 = vmatprep.subr.mxu1 %v1396_v2  ;;  %1074 = vmatprep.subr.mxu0 %v43_v5  ;;  %v1500_v14 = vld [vmem:[%s1916_s3 + $0x48] sm:$0xff]  ;;  %v1510_v16 = vld [vmem:[%s1916_s3 + $0x40] sm:$0xff]  ;;  %v1520_v18 = vld [vmem:[%s1916_s3 + $0x38] sm:$0xff] }
   0x7   :  { %1119 = vmatpush3.msra.mxu1 %v1460_v6  ;;  %1075 = vmatpush3.msra.mxu0 %v43_v5  ;;  %v36_v19 = vld [vmem:[%s1915_s2 + $0x30] sm:$0xff]  ;;  %v35_v21 = vld [vmem:[%s1915_s2 + $0x28] sm:$0xff]  ;;  %v34_v23 = vld [vmem:[%s1915_s2 + $0x20] sm:$0xff] }
   0x8   :  { %1120 = vmatprep.subr.mxu1 %v1396_v2  ;;  %1076 = vmatprep.subr.mxu0 %v42_v7  ;;  %v1530_v20 = vld [vmem:[%s1916_s3 + $0x30] sm:$0xff]  ;;  %v1540_v22 = vld [vmem:[%s1916_s3 + $0x28] sm:$0xff]  ;;  %v1550_v24 = vld [vmem:[%s1916_s3 + $0x20] sm:$0xff] }
   0x9   :  { %1121 = vmatpush3.msra.mxu1 %v1470_v8  ;;  %1077 = vmatpush3.msra.mxu0 %v42_v7  ;;  %v33_v25 = vld [vmem:[%s1915_s2 + $0x18] sm:$0xff]  ;;  %v32_v27 = vld [vmem:[%s1915_s2 + $0x10] sm:$0xff]  ;;  %v31_v29 = vld [vmem:[%s1915_s2 + $0x8] sm:$0xff] }
   0xa   :  { %1122 = vmatprep.subr.mxu1 %v1396_v2  ;;  %1078 = vmatprep.subr.mxu0 %v41_v9  ;;  %v1560_v26 = vld [vmem:[%s1916_s3 + $0x18] sm:$0xff]  ;;  %v1570_v28 = vld [vmem:[%s1916_s3 + $0x10] sm:$0xff]  ;;  %v22_v30 = vld [vmem:[%s1917_s0] sm:$0xff] }
   0xb   :  { %1123 = vmatpush3.msra.mxu1 %v1480_v10  ;;  %1079 = vmatpush3.msra.mxu0 %v41_v9  ;;  %v1584_v31 = vld [vmem:[%s1916_s3 + $0x8] sm:$0xff]  ;;  %v30_v32 = vld [vmem:[%s1915_s2] sm:$0xff]  ;;  %v24_v36 = vld [vmem:[%s1917_s0 + $0x10] sm:$0xff] }
   0xc   :  { %1124 = vmatprep.subr.mxu1 %v1396_v2  ;;  %1080 = vmatprep.subr.mxu0 %v40_v11  ;;  %v1593_v33 = vld [vmem:[%s1916_s3] sm:$0xff]  ;;  %v23_v34 = vld [vmem:[%s1917_s0 + $0x8] sm:$0xff]  ;;  %v25_v37 = vld [vmem:[%s1917_s0 + $0x18] sm:$0xff] }
   0xd   :  { %1125 = vmatpush3.msra.mxu1 %v1490_v12  ;;  %1081 = vmatpush3.msra.mxu0 %v40_v11  ;;  %v166_v35 = vld [vmem:[%s1918_s1] sm:$0xff]  ;;  %v27_v39 = vld [vmem:[%s1917_s0 + $0x28] sm:$0xff]  ;;  %v28_v40 = vld [vmem:[%s1917_s0 + $0x30] sm:$0xff] }
   0xe   :  { %1126 = vmatprep.subr.mxu1 %v1396_v2  ;;  %1082 = vmatprep.subr.mxu0 %v39_v13  ;;  %v26_v38 = vld [vmem:[%s1917_s0 + $0x20] sm:$0xff]  ;;  %v29_v41 = vld [vmem:[%s1917_s0 + $0x38] sm:$0xff] }
   0xf   :  { %1127 = vmatpush3.msra.mxu1 %v1500_v14  ;;  %1083 = vmatpush3.msra.mxu0 %v39_v13  ;;  %v1695_v44 = vld [vmem:[%s1919_s4] ss:$0 sm:$0xff] }
  0x10   :  { %1128 = vmatprep.subr.mxu1 %v1396_v2  ;;  %1084 = vmatprep.subr.mxu0 %v38_v15 }
  0x11   :  { %1129 = vmatpush3.msra.mxu1 %v1510_v16  ;;  %1085 = vmatpush3.msra.mxu0 %v38_v15 }
  0x12   :  { %1130 = vmatprep.subr.mxu1 %v1396_v2  ;;  %1086 = vmatprep.subr.mxu0 %v37_v17 }
  0x13   :  { %1131 = vmatpush3.msra.mxu1 %v1520_v18  ;;  %1087 = vmatpush3.msra.mxu0 %v37_v17 }
  0x14   :  { %1132 = vmatprep.subr.mxu1 %v1396_v2  ;;  %1088 = vmatprep.subr.mxu0 %v36_v19 }
  0x15   :  { %1133 = vmatpush3.msra.mxu1 %v1530_v20  ;;  %1089 = vmatpush3.msra.mxu0 %v36_v19 }
  0x16   :  { %1134 = vmatprep.subr.mxu1 %v1396_v2  ;;  %1090 = vmatprep.subr.mxu0 %v35_v21 }
  0x17   :  { %1135 = vmatpush3.msra.mxu1 %v1540_v22  ;;  %1091 = vmatpush3.msra.mxu0 %v35_v21 }
  0x18   :  { %1136 = vmatprep.subr.mxu1 %v1396_v2  ;;  %1092 = vmatprep.subr.mxu0 %v34_v23 }
  0x19   :  { %1137 = vmatpush3.msra.mxu1 %v1550_v24  ;;  %1093 = vmatpush3.msra.mxu0 %v34_v23 }
  0x1a   :  { %1138 = vmatprep.subr.mxu1 %v1396_v2  ;;  %1094 = vmatprep.subr.mxu0 %v33_v25 }
  0x1b   :  { %1139 = vmatpush3.msra.mxu1 %v1560_v26  ;;  %1095 = vmatpush3.msra.mxu0 %v33_v25 }
  0x1c   :  { %1140 = vmatprep.subr.mxu1 %v1396_v2  ;;  %1096 = vmatprep.subr.mxu0 %v32_v27 }
  0x1d   :  { %1141 = vmatpush3.msra.mxu1 %v1570_v28  ;;  %1097 = vmatpush3.msra.mxu0 %v32_v27 }
  0x1e   :  { %1142 = vmatprep.subr.mxu1 %v1396_v2  ;;  %1098 = vmatprep.subr.mxu0 %v31_v29 }
  0x1f   :  { %1102 = vmatprep.mubr.f32.mxu0 %v22_v30  ;;  %1099 = vmatpush3.msra.mxu0 %v31_v29 }
  0x20   :  { %1143 = vmatpush3.msra.mxu1 %v1584_v31  ;;  %1100 = vmatprep.subr.mxu0 %v30_v32 }
  0x21   :  { %1144 = vmatprep.subr.mxu1 %v1396_v2  ;;  %1101 = vmatpush3.msra.mxu0 %v30_v32 }
  0x22   :  { %1145 = vmatpush3.msra.mxu1 %v1593_v33  ;;  %1103 = vmatmul.mubr.f32.vlgmr.msra.gmra.mxu0 %v23_v34 }
  0x23   :  { %1147 = vmatmul.mubr.f32.vlgmr.msra.gmra.mxu1 %v166_v35  ;;  %1149 = vmatprep.subr.mxu0 %v1396_v2 }
  0x24   :  { %1105 = vmatprep.mubr.f32.mxu0 %v24_v36  ;;  %1150 = vmatpush3.msra.mxu0 %v1443_v3 }
  0x25   :  { %1184 = vmatprep.subr.mxu1 %v1396_v2  ;;  %1151 = vmatprep.subr.mxu0 %v1396_v2 }
  0x26   :  { %1185 = vmatpush3.msra.mxu1 %v1443_v3  ;;  %1152 = vmatpush3.msra.mxu0 %v1451_v4 }
  0x27   :  { %1186 = vmatprep.subr.mxu1 %v1396_v2  ;;  %1153 = vmatprep.subr.mxu0 %v1396_v2 }
  0x28   :  { %1106 = vmatmul.mubr.f32.gmra.mxu0 %v25_v37  ;;  %1187 = vmatpush3.msra.mxu1 %v1451_v4 }
  0x29   :  { %1154 = vmatpush3.msra.mxu0 %v1460_v6  ;;  %1108 = vmatprep.mubr.f32.mxu0 %v26_v38 }
  0x2a   :  { %1155 = vmatprep.subr.mxu0 %v1396_v2  ;;  %1188 = vmatprep.subr.mxu1 %v1396_v2 }
  0x2b   :  { %1156 = vmatpush3.msra.mxu0 %v1470_v8  ;;  %1189 = vmatpush3.msra.mxu1 %v1460_v6 }
  0x2c   :  { %1157 = vmatprep.subr.mxu0 %v1396_v2  ;;  %1109 = vmatmul.mubr.f32.gmra.mxu0 %v27_v39 }
  0x2d   :  { %1158 = vmatpush3.msra.mxu0 %v1480_v10  ;;  %1190 = vmatprep.subr.mxu1 %v1396_v2 }
  0x2e   :  { %1159 = vmatprep.subr.mxu0 %v1396_v2  ;;  %1191 = vmatpush3.msra.mxu1 %v1470_v8 }
  0x2f   :  { %1160 = vmatpush3.msra.mxu0 %v1490_v12  ;;  %1192 = vmatprep.subr.mxu1 %v1396_v2 }
  0x30   :  { %1161 = vmatprep.subr.mxu0 %v1396_v2  ;;  %1193 = vmatpush3.msra.mxu1 %v1480_v10 }
  0x31   :  { %1162 = vmatpush3.msra.mxu0 %v1500_v14  ;;  %1194 = vmatprep.subr.mxu1 %v1396_v2 }
  0x32   :  { %1163 = vmatprep.subr.mxu0 %v1396_v2  ;;  %1195 = vmatpush3.msra.mxu1 %v1490_v12 }
  0x33   :  { %1164 = vmatpush3.msra.mxu0 %v1510_v16  ;;  %1196 = vmatprep.subr.mxu1 %v1396_v2 }
  0x34   :  { %1165 = vmatprep.subr.mxu0 %v1396_v2  ;;  %1197 = vmatpush3.msra.mxu1 %v1500_v14 }
  0x35   :  { %1166 = vmatpush3.msra.mxu0 %v1520_v18  ;;  %1198 = vmatprep.subr.mxu1 %v1396_v2 }
  0x36   :  { %1167 = vmatprep.subr.mxu0 %v1396_v2  ;;  %1199 = vmatpush3.msra.mxu1 %v1510_v16 }
  0x37   :  { %1168 = vmatpush3.msra.mxu0 %v1530_v20  ;;  %1200 = vmatprep.subr.mxu1 %v1396_v2 }
  0x38   :  { %1169 = vmatprep.subr.mxu0 %v1396_v2  ;;  %1201 = vmatpush3.msra.mxu1 %v1520_v18 }
  0x39   :  { %1170 = vmatpush3.msra.mxu0 %v1540_v22  ;;  %1202 = vmatprep.subr.mxu1 %v1396_v2 }
  0x3a   :  { %1171 = vmatprep.subr.mxu0 %v1396_v2  ;;  %1203 = vmatpush3.msra.mxu1 %v1530_v20 }
  0x3b   :  { %1172 = vmatpush3.msra.mxu0 %v1550_v24  ;;  %1204 = vmatprep.subr.mxu1 %v1396_v2 }
  0x3c   :  { %1173 = vmatprep.subr.mxu0 %v1396_v2  ;;  %1205 = vmatpush3.msra.mxu1 %v1540_v22 }
  0x3d   :  { %1174 = vmatpush3.msra.mxu0 %v1560_v26  ;;  %1206 = vmatprep.subr.mxu1 %v1396_v2 }
  0x3e   :  { %1175 = vmatprep.subr.mxu0 %v1396_v2  ;;  %1207 = vmatpush3.msra.mxu1 %v1550_v24 }
  0x3f   :  { %1176 = vmatpush3.msra.mxu0 %v1570_v28  ;;  %1208 = vmatprep.subr.mxu1 %v1396_v2 }
  0x40   :  { %1177 = vmatprep.subr.mxu0 %v1396_v2  ;;  %1209 = vmatpush3.msra.mxu1 %v1560_v26 }
  0x41   :  { %1178 = vmatpush3.msra.mxu0 %v1584_v31  ;;  %1210 = vmatprep.subr.mxu1 %v1396_v2 }
  0x42   :  { %1179 = vmatprep.subr.mxu0 %v1396_v2  ;;  %1211 = vmatpush3.msra.mxu1 %v1570_v28 }
  0x43   :  { %1180 = vmatpush3.msra.mxu0 %v1593_v33  ;;  %1212 = vmatprep.subr.mxu1 %v1396_v2 }
  0x44   :  { %1216 = vmatprep.mubr.msk.f32.mxu1 %vm1397_vm0, %v1396_v2  ;;  %1213 = vmatpush3.msra.mxu1 %v1584_v31 }
  0x45   :  { %1219 = vmatprep.subr.mxu0 %v1396_v2  ;;  %1214 = vmatprep.subr.mxu1 %v1396_v2 }
  0x46   :  { %1215 = vmatpush3.msra.mxu1 %v1593_v33  ;;  %1111 = vmatprep.mubr.f32.mxu0 %v28_v40 }
  0x47   :  { %1254 = vmatprep.subr.mxu1 %v1396_v2  ;;  %1112 = vmatmul.mubr.f32.gmra.mxu0 %v29_v41 }
  0x48   :  { %1181 = vmatprep.mubr.msk.f32.mxu0 %vm1397_vm0, %v1396_v2 }
  0xe2   :  { %v1104_v42 = vpop.f32.mrf.mxu0 }
  0xe3   :  { %v250_v43 = vpop.f32.mrf.mxu1  ;;  %v125_v55 = vadd.f32 %v1104_v42, %v1695_v44 }
  0xe4   :  { %v119_v45 = vpop.f32.mrf.mxu0 }
  0xe5   :  { %v1148_v46 = vpop.f32.mrf.mxu1  ;;  %v120_v47 = vadd.f32 %v1695_v44, %v119_v45 }
  0xe7   :  { %v254_v48 = vadd.f32 %v250_v43, %v120_v47 }
  0xe8   :  { %v1735_v49 = vpop.f32.mrf.mxu0 }
  0xe9   :  { %255 = vst [vmem:[%s1920_s5] sm:$0xff] %v254_v48  ;;  %1182 = vmatmul.mubr.f32.vlgmr.msra.gmra.mxu0 %v254_v48  ;;  %v135_v63 = vadd.f32 %v1735_v49, %v1695_v44 }
  0xea   :  { %1220 = vmatpush3.msra.mxu0 %v1443_v3  ;;  %1251 = vmatprep.mubr.msk.f32.mxu0 %vm1397_vm0, %v1396_v2  ;;  %v129_v50 = vpop.f32.mrf.mxu0 }
  0xeb   :  { %1221 = vmatprep.subr.mxu0 %v1396_v2  ;;  %v130_v59 = vadd.f32 %v1695_v44, %v129_v50 }
  0xec   :  { %1222 = vmatpush3.msra.mxu0 %v1451_v4  ;;  %v1737_v51 = vpop.f32.mrf.mxu0 }
  0xed   :  { %1223 = vmatprep.subr.mxu0 %v1396_v2 }
  0xee   :  { %1224 = vmatpush3.msra.mxu0 %v1460_v6  ;;  %v1739_v52 = vpop.f32.mrf.mxu0 }
  0xef   :  { %1225 = vmatprep.subr.mxu0 %v1396_v2  ;;  %v140_v7 = vadd.f32 %v1695_v44, %v1739_v52 }
  0xf0   :  { %1226 = vmatpush3.msra.mxu0 %v1470_v8 }
  0xf1   :  { %1227 = vmatprep.subr.mxu0 %v1396_v2 }
  0xf2   :  { %1228 = vmatpush3.msra.mxu0 %v1480_v10 }
  0xf3   :  { %1229 = vmatprep.subr.mxu0 %v1396_v2 }
  0xf4   :  { %1230 = vmatpush3.msra.mxu0 %v1490_v12 }
  0xf5   :  { %1231 = vmatprep.subr.mxu0 %v1396_v2 }
  0xf6   :  { %1232 = vmatpush3.msra.mxu0 %v1500_v14 }
  0xf7   :  { %1233 = vmatprep.subr.mxu0 %v1396_v2 }
  0xf8   :  { %1234 = vmatpush3.msra.mxu0 %v1510_v16 }
  0xf9   :  { %1235 = vmatprep.subr.mxu0 %v1396_v2 }
  0xfa   :  { %1236 = vmatpush3.msra.mxu0 %v1520_v18 }
  0xfb   :  { %1237 = vmatprep.subr.mxu0 %v1396_v2 }
  0xfc   :  { %1238 = vmatpush3.msra.mxu0 %v1530_v20 }
  0xfd   :  { %1239 = vmatprep.subr.mxu0 %v1396_v2 }
  0xfe   :  { %1240 = vmatpush3.msra.mxu0 %v1540_v22 }
  0xff   :  { %1241 = vmatprep.subr.mxu0 %v1396_v2 }
 0x100   :  { %1242 = vmatpush3.msra.mxu0 %v1550_v24 }
 0x101   :  { %1243 = vmatprep.subr.mxu0 %v1396_v2 }
 0x102   :  { %1244 = vmatpush3.msra.mxu0 %v1560_v26 }
 0x103   :  { %1245 = vmatprep.subr.mxu0 %v1396_v2 }
 0x104   :  { %1246 = vmatpush3.msra.mxu0 %v1570_v28 }
 0x105   :  { %1247 = vmatprep.subr.mxu0 %v1396_v2 }
 0x106   :  { %1248 = vmatpush3.msra.mxu0 %v1584_v31 }
 0x107   :  { %1249 = vmatprep.subr.mxu0 %v1396_v2  ;;  %v1741_v53 = vpop.f32.mrf.mxu0 }
 0x108   :  { %1250 = vmatpush3.msra.mxu0 %v1593_v33 }
 0x109   :  { %1289 = vmatprep.subr.mxu0 %v1396_v2  ;;  %v1743_v54 = vpop.f32.mrf.mxu0 }
 0x1a9   :  { %v340_v56 = vpop.f32.mrf.mxu0 }
 0x1aa   :  { %v344_v57 = vadd.f32 %v340_v56, %v125_v55 }
 0x1ab   :  { %v1183_v58 = vpop.f32.mrf.mxu0 }
 0x1ac   :  { %903 = vst [vmem:[%s1920_s5 + $0x8] sm:$0xff] %v344_v57  ;;  %1217 = vmatmul.mubr.f32.vlgmr.msra.gmra.mxu1 %v344_v57 }
 0x1ad   :  { %1255 = vmatpush3.msra.mxu1 %v1443_v3  ;;  %1286 = vmatprep.mubr.msk.f32.mxu1 %vm1397_vm0, %v1396_v2 }
 0x1ae   :  { %1256 = vmatprep.subr.mxu1 %v1396_v2 }
 0x1af   :  { %1257 = vmatpush3.msra.mxu1 %v1451_v4 }
 0x1b0   :  { %1258 = vmatprep.subr.mxu1 %v1396_v2 }
 0x1b1   :  { %1259 = vmatpush3.msra.mxu1 %v1460_v6 }
 0x1b2   :  { %1260 = vmatprep.subr.mxu1 %v1396_v2 }
 0x1b3   :  { %1261 = vmatpush3.msra.mxu1 %v1470_v8 }
 0x1b4   :  { %1262 = vmatprep.subr.mxu1 %v1396_v2 }
 0x1b5   :  { %1263 = vmatpush3.msra.mxu1 %v1480_v10 }
 0x1b6   :  { %1264 = vmatprep.subr.mxu1 %v1396_v2 }
 0x1b7   :  { %1265 = vmatpush3.msra.mxu1 %v1490_v12 }
 0x1b8   :  { %1266 = vmatprep.subr.mxu1 %v1396_v2 }
 0x1b9   :  { %1267 = vmatpush3.msra.mxu1 %v1500_v14 }
 0x1ba   :  { %1268 = vmatprep.subr.mxu1 %v1396_v2 }
 0x1bb   :  { %1269 = vmatpush3.msra.mxu1 %v1510_v16 }
 0x1bc   :  { %1270 = vmatprep.subr.mxu1 %v1396_v2 }
 0x1bd   :  { %1271 = vmatpush3.msra.mxu1 %v1520_v18 }
 0x1be   :  { %1272 = vmatprep.subr.mxu1 %v1396_v2 }
 0x1bf   :  { %1273 = vmatpush3.msra.mxu1 %v1530_v20 }
 0x1c0   :  { %1274 = vmatprep.subr.mxu1 %v1396_v2 }
 0x1c1   :  { %1275 = vmatpush3.msra.mxu1 %v1540_v22 }
 0x1c2   :  { %1276 = vmatprep.subr.mxu1 %v1396_v2 }
 0x1c3   :  { %1277 = vmatpush3.msra.mxu1 %v1550_v24 }
 0x1c4   :  { %1278 = vmatprep.subr.mxu1 %v1396_v2 }
 0x1c5   :  { %1279 = vmatpush3.msra.mxu1 %v1560_v26 }
 0x1c6   :  { %1280 = vmatprep.subr.mxu1 %v1396_v2 }
 0x1c7   :  { %1281 = vmatpush3.msra.mxu1 %v1570_v28 }
 0x1c8   :  { %1282 = vmatprep.subr.mxu1 %v1396_v2 }
 0x1c9   :  { %1283 = vmatpush3.msra.mxu1 %v1584_v31 }
 0x1ca   :  { %1284 = vmatprep.subr.mxu1 %v1396_v2 }
 0x1cb   :  { %1285 = vmatpush3.msra.mxu1 %v1593_v33 }
 0x1cc   :  { %1324 = vmatprep.subr.mxu1 %v1396_v2 }
 0x26c   :  { %v431_v60 = vpop.f32.mrf.mxu1 }
 0x26d   :  { %v435_v61 = vadd.f32 %v431_v60, %v130_v59 }
 0x26e   :  { %v1218_v62 = vpop.f32.mrf.mxu1 }
 0x26f   :  { %904 = vst [vmem:[%s1920_s5 + $0x10] sm:$0xff] %v435_v61  ;;  %1252 = vmatmul.mubr.f32.vlgmr.msra.gmra.mxu0 %v435_v61 }
 0x270   :  { %1290 = vmatpush3.msra.mxu0 %v1443_v3  ;;  %1321 = vmatprep.mubr.msk.f32.mxu0 %vm1397_vm0, %v1396_v2 }
 0x271   :  { %1291 = vmatprep.subr.mxu0 %v1396_v2 }
 0x272   :  { %1292 = vmatpush3.msra.mxu0 %v1451_v4 }
 0x273   :  { %1293 = vmatprep.subr.mxu0 %v1396_v2 }
 0x274   :  { %1294 = vmatpush3.msra.mxu0 %v1460_v6 }
 0x275   :  { %1295 = vmatprep.subr.mxu0 %v1396_v2 }
 0x276   :  { %1296 = vmatpush3.msra.mxu0 %v1470_v8 }
 0x277   :  { %1297 = vmatprep.subr.mxu0 %v1396_v2 }
 0x278   :  { %1298 = vmatpush3.msra.mxu0 %v1480_v10 }
 0x279   :  { %1299 = vmatprep.subr.mxu0 %v1396_v2 }
 0x27a   :  { %1300 = vmatpush3.msra.mxu0 %v1490_v12 }
 0x27b   :  { %1301 = vmatprep.subr.mxu0 %v1396_v2 }
 0x27c   :  { %1302 = vmatpush3.msra.mxu0 %v1500_v14 }
 0x27d   :  { %1303 = vmatprep.subr.mxu0 %v1396_v2 }
 0x27e   :  { %1304 = vmatpush3.msra.mxu0 %v1510_v16 }
 0x27f   :  { %1305 = vmatprep.subr.mxu0 %v1396_v2 }
 0x280   :  { %1306 = vmatpush3.msra.mxu0 %v1520_v18 }
 0x281   :  { %1307 = vmatprep.subr.mxu0 %v1396_v2 }
 0x282   :  { %1308 = vmatpush3.msra.mxu0 %v1530_v20 }
 0x283   :  { %1309 = vmatprep.subr.mxu0 %v1396_v2 }
 0x284   :  { %1310 = vmatpush3.msra.mxu0 %v1540_v22 }
 0x285   :  { %1311 = vmatprep.subr.mxu0 %v1396_v2 }
 0x286   :  { %1312 = vmatpush3.msra.mxu0 %v1550_v24 }
 0x287   :  { %1313 = vmatprep.subr.mxu0 %v1396_v2 }
 0x288   :  { %1314 = vmatpush3.msra.mxu0 %v1560_v26 }
 0x289   :  { %1315 = vmatprep.subr.mxu0 %v1396_v2 }
 0x28a   :  { %1316 = vmatpush3.msra.mxu0 %v1570_v28 }
 0x28b   :  { %1317 = vmatprep.subr.mxu0 %v1396_v2 }
 0x28c   :  { %1318 = vmatpush3.msra.mxu0 %v1584_v31 }
 0x28d   :  { %1319 = vmatprep.subr.mxu0 %v1396_v2 }
 0x28e   :  { %1320 = vmatpush3.msra.mxu0 %v1593_v33 }
 0x28f   :  { %1359 = vmatprep.subr.mxu0 %v1396_v2 }
 0x32f   :  { %v522_v0 = vpop.f32.mrf.mxu0 }
 0x330   :  { %v526_v1 = vadd.f32 %v522_v0, %v135_v63 }
 0x331   :  { %v1253_v5 = vpop.f32.mrf.mxu0 }
 0x332   :  { %905 = vst [vmem:[%s1920_s5 + $0x18] sm:$0xff] %v526_v1  ;;  %1287 = vmatmul.mubr.f32.vlgmr.msra.gmra.mxu1 %v526_v1 }
 0x333   :  { %1325 = vmatpush3.msra.mxu1 %v1443_v3  ;;  %1356 = vmatprep.mubr.msk.f32.mxu1 %vm1397_vm0, %v1396_v2 }
 0x334   :  { %1326 = vmatprep.subr.mxu1 %v1396_v2 }
 0x335   :  { %1327 = vmatpush3.msra.mxu1 %v1451_v4 }
 0x336   :  { %1328 = vmatprep.subr.mxu1 %v1396_v2 }
 0x337   :  { %1329 = vmatpush3.msra.mxu1 %v1460_v6 }
 0x338   :  { %1330 = vmatprep.subr.mxu1 %v1396_v2 }
 0x339   :  { %1331 = vmatpush3.msra.mxu1 %v1470_v8 }
 0x33a   :  { %1332 = vmatprep.subr.mxu1 %v1396_v2 }
 0x33b   :  { %1333 = vmatpush3.msra.mxu1 %v1480_v10 }
 0x33c   :  { %1334 = vmatprep.subr.mxu1 %v1396_v2 }
 0x33d   :  { %1335 = vmatpush3.msra.mxu1 %v1490_v12 }
 0x33e   :  { %1336 = vmatprep.subr.mxu1 %v1396_v2 }
 0x33f   :  { %1337 = vmatpush3.msra.mxu1 %v1500_v14 }
 0x340   :  { %1338 = vmatprep.subr.mxu1 %v1396_v2 }
 0x341   :  { %1339 = vmatpush3.msra.mxu1 %v1510_v16 }
 0x342   :  { %1340 = vmatprep.subr.mxu1 %v1396_v2 }
 0x343   :  { %1341 = vmatpush3.msra.mxu1 %v1520_v18 }
 0x344   :  { %1342 = vmatprep.subr.mxu1 %v1396_v2 }
 0x345   :  { %1343 = vmatpush3.msra.mxu1 %v1530_v20 }
 0x346   :  { %1344 = vmatprep.subr.mxu1 %v1396_v2 }
 0x347   :  { %1345 = vmatpush3.msra.mxu1 %v1540_v22 }
 0x348   :  { %1346 = vmatprep.subr.mxu1 %v1396_v2 }
 0x349   :  { %1347 = vmatpush3.msra.mxu1 %v1550_v24 }
 0x34a   :  { %1348 = vmatprep.subr.mxu1 %v1396_v2 }
 0x34b   :  { %1349 = vmatpush3.msra.mxu1 %v1560_v26 }
 0x34c   :  { %1350 = vmatprep.subr.mxu1 %v1396_v2 }
 0x34d   :  { %1351 = vmatpush3.msra.mxu1 %v1570_v28 }
 0x34e   :  { %1352 = vmatprep.subr.mxu1 %v1396_v2 }
 0x34f   :  { %1353 = vmatpush3.msra.mxu1 %v1584_v31 }
 0x350   :  { %1354 = vmatprep.subr.mxu1 %v1396_v2 }
 0x351   :  { %1355 = vmatpush3.msra.mxu1 %v1593_v33 }
 0x3f2   :  { %v613_v9 = vpop.f32.mrf.mxu1 }
 0x3f3   :  { %v617_v11 = vadd.f32 %v613_v9, %v140_v7 }
 0x3f4   :  { %v1288_v13 = vpop.f32.mrf.mxu1 }
 0x3f5   :  { %906 = vst [vmem:[%s1920_s5 + $0x20] sm:$0xff] %v617_v11  ;;  %1322 = vmatmul.mubr.f32.vlgmr.msra.gmra.mxu0 %v617_v11 }
 0x3f6   :  { %1360 = vmatpush3.msra.mxu0 %v1443_v3  ;;  %1391 = vmatprep.mubr.msk.f32.mxu0 %vm1397_vm0, %v1396_v2  ;;  %v145_v3 = vadd.f32 %v1737_v51, %v1695_v44 }
 0x3f7   :  { %1361 = vmatprep.subr.mxu0 %v1396_v2 }
 0x3f8   :  { %1362 = vmatpush3.msra.mxu0 %v1451_v4 }
 0x3f9   :  { %1363 = vmatprep.subr.mxu0 %v1396_v2 }
 0x3fa   :  { %1364 = vmatpush3.msra.mxu0 %v1460_v6 }
 0x3fb   :  { %1365 = vmatprep.subr.mxu0 %v1396_v2 }
 0x3fc   :  { %1366 = vmatpush3.msra.mxu0 %v1470_v8 }
 0x3fd   :  { %1367 = vmatprep.subr.mxu0 %v1396_v2 }
 0x3fe   :  { %1368 = vmatpush3.msra.mxu0 %v1480_v10  ;;  %v150_v10 = vadd.f32 %v1695_v44, %v1743_v54 }
 0x3ff   :  { %1369 = vmatprep.subr.mxu0 %v1396_v2 }
 0x400   :  { %1370 = vmatpush3.msra.mxu0 %v1490_v12 }
 0x401   :  { %1371 = vmatprep.subr.mxu0 %v1396_v2 }
 0x402   :  { %1372 = vmatpush3.msra.mxu0 %v1500_v14 }
 0x403   :  { %1373 = vmatprep.subr.mxu0 %v1396_v2 }
 0x404   :  { %1374 = vmatpush3.msra.mxu0 %v1510_v16 }
 0x405   :  { %1375 = vmatprep.subr.mxu0 %v1396_v2 }
 0x406   :  { %1376 = vmatpush3.msra.mxu0 %v1520_v18 }
 0x407   :  { %1377 = vmatprep.subr.mxu0 %v1396_v2 }
 0x408   :  { %1378 = vmatpush3.msra.mxu0 %v1530_v20 }
 0x409   :  { %1379 = vmatprep.subr.mxu0 %v1396_v2 }
 0x40a   :  { %1380 = vmatpush3.msra.mxu0 %v1540_v22 }
 0x40b   :  { %1381 = vmatprep.subr.mxu0 %v1396_v2 }
 0x40c   :  { %1382 = vmatpush3.msra.mxu0 %v1550_v24 }
 0x40d   :  { %1383 = vmatprep.subr.mxu0 %v1396_v2 }
 0x40e   :  { %1384 = vmatpush3.msra.mxu0 %v1560_v26 }
 0x40f   :  { %1385 = vmatprep.subr.mxu0 %v1396_v2 }
 0x410   :  { %1386 = vmatpush3.msra.mxu0 %v1570_v28 }
 0x411   :  { %1387 = vmatprep.subr.mxu0 %v1396_v2 }
 0x412   :  { %1388 = vmatpush3.msra.mxu0 %v1584_v31 }
 0x413   :  { %1389 = vmatprep.subr.mxu0 %v1396_v2  ;;  %v155_v2 = vadd.f32 %v1741_v53, %v1695_v44 }
 0x414   :  { %1390 = vmatpush3.msra.mxu0 %v1593_v33 }
 0x4b5   :  { %v704_v4 = vpop.f32.mrf.mxu0 }
 0x4b6   :  { %v708_v6 = vadd.f32 %v704_v4, %v145_v3 }
 0x4b7   :  { %v1323_v8 = vpop.f32.mrf.mxu0 }
 0x4b8   :  { %907 = vst [vmem:[%s1920_s5 + $0x28] sm:$0xff] %v708_v6  ;;  %1357 = vmatmul.mubr.f32.vlgmr.msra.gmra.mxu1 %v708_v6 }
 0x578   :  { %v795_v12 = vpop.f32.mrf.mxu1 }
 0x579   :  { %v799_v14 = vadd.f32 %v795_v12, %v150_v10 }
 0x57a   :  { %v1358_v15 = vpop.f32.mrf.mxu1 }
 0x57b   :  { %908 = vst [vmem:[%s1920_s5 + $0x30] sm:$0xff] %v799_v14  ;;  %1392 = vmatmul.mubr.f32.vlgmr.msra.gmra.mxu0 %v799_v14 }
 0x63b   :  { %v886_v16 = vpop.f32.mrf.mxu0 }
 0x63c   :  { %v890_v17 = vadd.f32 %v886_v16, %v155_v2 }
 0x63d   :  { %v1393_v18 = vpop.f32.mrf.mxu0 }
 0x63e   :  { %909 = vst [vmem:[%s1920_s5 + $0x38] sm:$0xff] %v890_v17  ;;  %893 = vst [vmem:[%s1921_s6] sm:$0xff] %v890_v17 }

</bundles_post_ra>
